<compile_context>
chip_gen: v7x
topology: tpu7x:2x2x1
jax: 0.10.0
libtpu: 0.0.40
codegen_flags: <defaults>
</compile_context>

<pallas_src>
import jax
import jax.numpy as jnp
from jax.experimental import pallas as pl
from jax.experimental.pallas import tpu as pltpu


def _leaky_relu(x, slope=0.2):
    return jnp.where(x > 0, x, slope * x)


def _round_up(x, m):
    return ((x + m - 1) // m) * m


def classifier_kernel(z_ref, w1_ref, b1_ref, w2_ref, b2_ref, w3_ref, b3_ref, out_ref):
    # z_ref:  (TM, latent_dim)
    # w1_ref: (latent_dim, 512), b1_ref: (1, 512)
    # w2_ref: (512, 256),        b2_ref: (1, 256)
    # w3_ref: (256, NP),         b3_ref: (1, NP)   (NP = num_classes padded to 128)
    # out_ref: (TM, NP)
    z = z_ref[...].astype(w1_ref.dtype)
    h1 = jnp.dot(z, w1_ref[...], preferred_element_type=jnp.float32) + b1_ref[...]
    h1 = _leaky_relu(h1)
    h2 = jnp.dot(h1.astype(w2_ref.dtype), w2_ref[...],
                 preferred_element_type=jnp.float32) + b2_ref[...]
    h2 = _leaky_relu(h2)
    logits = jnp.dot(h2.astype(w3_ref.dtype), w3_ref[...],
                     preferred_element_type=jnp.float32) + b3_ref[...]
    out_ref[...] = logits.astype(out_ref.dtype)


def prepare_params(params, dtype=jnp.bfloat16):
    """One-time param prep (do this OUTSIDE the per-step forward):
      * cast weights/biases to the compute dtype (bf16 default: half DMA bytes,
        full-rate MXU on v6e/v7x; kernel accumulates in f32 either way)
      * zero-pad the final layer to a lane-dense multiple of 128 output columns
        so the logits store is a full unmasked (TM, 128k) tile.
    Returns (prepped_params, num_classes)."""
    w1, b1, w2, b2, w3, b3 = params
    num_classes = w3.shape[1]
    np_out = _round_up(max(num_classes, 128), 128)
    if np_out != num_classes:
        w3 = jnp.pad(w3, ((0, 0), (0, np_out - num_classes)))
        b3 = jnp.pad(b3, ((0, 0), (0, np_out - num_classes)))
    prepped = tuple(jnp.asarray(p, dtype=dtype) for p in (w1, b1, w2, b2, w3, b3))
    return prepped, num_classes


def classifier_forward(z, prepped_params, num_classes, *, tm=512, cores=1,
                       out_dtype=jnp.float32):
    """z: (B, latent_dim). `prepped_params` from prepare_params().
    Returns logits (B, num_classes) in `out_dtype`.
    `cores=2` on v7x splits the batch across both TensorCores when B >= 16."""
    w1, b1, w2, b2, w3, b3 = prepped_params
    B, latent_dim = z.shape
    h1_dim, h2_dim = w1.shape[1], w2.shape[1]
    np_out = w3.shape[1]

    # --- balanced batch tiling: at most 7 padded rows, >= `cores` grid steps ---
    min_tiles = cores if B >= 8 * cores else 1
    n_tiles = max(pl.cdiv(B, tm), min_tiles)
    tm_eff = _round_up(pl.cdiv(B, n_tiles), 8)
    n_tiles = pl.cdiv(B, tm_eff)
    b_pad = n_tiles * tm_eff
    if b_pad != B:
        # Padded rows are zeros, produce finite logits, and are sliced off below.
        z = jnp.pad(z, ((0, b_pad - B), (0, 0)))

    grid = (n_tiles,)

    def bcast_spec(arr):
        # Grid-invariant weight/bias blocks (same block every step -> fetched once).
        return pl.BlockSpec(arr.shape, lambda i: (0,) * arr.ndim)

    param_bytes = sum(int(a.size) * jnp.dtype(a.dtype).itemsize
                      for a in (w1, b1, w2, b2, w3, b3))
    z_bytes = int(z.size) * jnp.dtype(z.dtype).itemsize
    out_itemsize = jnp.dtype(out_dtype).itemsize
    flops = 2 * b_pad * (latent_dim * h1_dim + h1_dim * h2_dim + h2_dim * np_out)
    cost = pl.CostEstimate(flops=int(flops), transcendentals=0,
                           bytes_accessed=int(param_bytes + z_bytes
                                              + b_pad * np_out * out_itemsize))

    # Rough per-step VMEM footprint: double-buffered z tile + params + output tile
    # plus f32 intermediates.  Only set vmem_limit_bytes when it actually matters
    # (keeps v5e's 16 MiB scoped default untouched for normal tile sizes).
    est_vmem = (2 * (tm_eff * latent_dim * jnp.dtype(z.dtype).itemsize + param_bytes)
                + 2 * tm_eff * np_out * out_itemsize
                + tm_eff * (h1_dim + h2_dim) * 4)
    compiler_kwargs = dict(dimension_semantics=("parallel",))
    if est_vmem > 12 * 1024 * 1024:
        # Cap below v7x's 64 MiB physical VMEM.
        compiler_kwargs["vmem_limit_bytes"] = min(int(2 * est_vmem), 56 * 1024 * 1024)

    out = pl.pallas_call(
        classifier_kernel,
        out_shape=jax.ShapeDtypeStruct((b_pad, np_out), out_dtype),
        grid_spec=pltpu.PrefetchScalarGridSpec(
            num_scalar_prefetch=0,
            grid=grid,
            in_specs=[
                pl.BlockSpec((tm_eff, latent_dim), lambda i: (i, 0)),
                bcast_spec(w1), bcast_spec(b1),
                bcast_spec(w2), bcast_spec(b2),
                bcast_spec(w3), bcast_spec(b3),
            ],
            out_specs=pl.BlockSpec((tm_eff, np_out), lambda i: (i, 0)),
        ),
        compiler_params=pltpu.CompilerParams(**compiler_kwargs),
        cost_estimate=cost,
    )(z, w1, b1, w2, b2, w3, b3)

    return out[:B, :num_classes]


def init_params(key, latent_dim, num_classes=2, dtype=jnp.float32):
    """PyTorch-style uniform init; weights stored as (in_features, out_features)."""
    def linear_init(k, fan_in, fan_out):
        kw, kb = jax.random.split(k)
        bound = 1.0 / jnp.sqrt(fan_in)
        w = jax.random.uniform(kw, (fan_in, fan_out), jnp.float32, -bound, bound)
        b = jax.random.uniform(kb, (1, fan_out), jnp.float32, -bound, bound)
        return w.astype(dtype), b.astype(dtype)

    k1, k2, k3 = jax.random.split(key, 3)
    w1, b1 = linear_init(k1, latent_dim, 512)
    w2, b2 = linear_init(k2, 512, 256)
    w3, b3 = linear_init(k3, 256, num_classes)
    return (w1, b1, w2, b2, w3, b3)


def reference_forward(z, params):
    w1, b1, w2, b2, w3, b3 = [p.astype(jnp.float32) for p in params]
    h1 = _leaky_relu(z.astype(jnp.float32) @ w1 + b1)
    h2 = _leaky_relu(h1 @ w2 + b2)
    return h2 @ w3 + b3


if __name__ == "__main__":
    key = jax.random.PRNGKey(0)
    k_params, k_z1, k_z2, k_z3 = jax.random.split(key, 4)

    latent_dim = 32
    num_classes = 2
    params = init_params(k_params, latent_dim, num_classes)

    # --- f32 params, MXU-tile-aligned batch: tight tolerance ---
    prepped_f32, nc = prepare_params(params, dtype=jnp.float32)
    z = jax.random.normal(k_z1, (8, latent_dim), dtype=jnp.float32)
    logits = jax.block_until_ready(classifier_forward(z, prepped_f32, nc))
    ref = reference_forward(z, params)
    assert logits.shape == (8, num_classes)
    assert jnp.allclose(logits, ref, atol=1e-4, rtol=1e-4), "mismatch (f32, batch=8)"

    # --- odd batch exercises the minimal batch-padding path ---
    z2 = jax.random.normal(k_z2, (13, latent_dim), dtype=jnp.float32)
    logits2 = jax.block_until_ready(classifier_forward(z2, prepped_f32, nc))
    ref2 = reference_forward(z2, params)
    assert logits2.shape == (13, num_classes)
    assert jnp.allclose(logits2, ref2, atol=1e-4, rtol=1e-4), "mismatch (f32, batch=13)"

    # --- bf16 params (default prep) + multi-tile grid (cores=2 path) ---
    prepped_bf16, nc = prepare_params(params)  # bf16 by default
    z3 = jax.random.normal(k_z3, (64, latent_dim), dtype=jnp.float32)
    logits3 = jax.block_until_ready(classifier_forward(z3, prepped_bf16, nc, cores=2))
    ref3 = reference_forward(z3, prepped_bf16[:2] + params[2:4] + prepped_bf16[4:])
    ref3_full = reference_forward(z3, [p.astype(jnp.bfloat16) for p in params])
    assert logits3.shape == (64, num_classes)
    # bf16 intermediate casts loosen tolerance vs the f32 reference (expected).
    assert jnp.allclose(logits3, ref3_full, atol=5e-2, rtol=5e-2), "mismatch (bf16, batch=64)"

    print("KERNEL_OK")
</pallas_src>

<mosaic_0001>
module attributes {stable_mosaic.version = 11 : i64} {
  func.func @classifier_kernel(%arg0: i32, %arg1: memref<8x32xf32, #tpu.memory_space<vmem>>, %arg2: memref<32x512xf32, #tpu.memory_space<vmem>>, %arg3: memref<1x512xf32, #tpu.memory_space<vmem>>, %arg4: memref<512x256xf32, #tpu.memory_space<vmem>>, %arg5: memref<1x256xf32, #tpu.memory_space<vmem>>, %arg6: memref<256x128xf32, #tpu.memory_space<vmem>>, %arg7: memref<1x128xf32, #tpu.memory_space<vmem>>, %arg8: memref<8x128xf32, #tpu.memory_space<vmem>>) attributes {dimension_semantics = [#tpu.dimension_semantics<parallel>], iteration_bounds = array<i64: 1>, scalar_prefetch = 0 : i64, scratch_operands = 0 : i64, tpu.core_type = #tpu.core_type<tc>, window_params = [{transform_indices = @transform_0, window_bounds = array<i64: 8, 32>}, {pipeline_mode = #tpu.pipeline_mode<synchronous>, transform_indices = @transform_1, window_bounds = array<i64: 32, 512>}, {pipeline_mode = #tpu.pipeline_mode<synchronous>, transform_indices = @transform_2, window_bounds = array<i64: 1, 512>}, {pipeline_mode = #tpu.pipeline_mode<synchronous>, transform_indices = @transform_3, window_bounds = array<i64: 512, 256>}, {pipeline_mode = #tpu.pipeline_mode<synchronous>, transform_indices = @transform_4, window_bounds = array<i64: 1, 256>}, {pipeline_mode = #tpu.pipeline_mode<synchronous>, transform_indices = @transform_5, window_bounds = array<i64: 256, 128>}, {pipeline_mode = #tpu.pipeline_mode<synchronous>, transform_indices = @transform_6, window_bounds = array<i64: 1, 128>}, {transform_indices = @transform_7, window_bounds = array<i64: 8, 128>}]} {
    %c0 = arith.constant 0 : index
    %c0_0 = arith.constant 0 : index
    %0 = vector.load %arg1[%c0, %c0_0] : memref<8x32xf32, #tpu.memory_space<vmem>>, vector<8x32xf32>
    %c0_1 = arith.constant 0 : index
    %c0_2 = arith.constant 0 : index
    %1 = vector.load %arg2[%c0_1, %c0_2] : memref<32x512xf32, #tpu.memory_space<vmem>>, vector<32x512xf32>
    %cst = arith.constant dense<0.000000e+00> : vector<8x512xf32>
    %2 = tpu.matmul %0, %1, %cst {dimension_numbers = #tpu.dot_dimension_numbers<[1], [0], [0], [1], [0, 0, 1, 1], [], []>} : vector<8x32xf32>, vector<32x512xf32>, vector<8x512xf32> -> vector<8x512xf32>
    %c0_3 = arith.constant 0 : index
    %c0_4 = arith.constant 0 : index
    %3 = vector.load %arg3[%c0_3, %c0_4] : memref<1x512xf32, #tpu.memory_space<vmem>>, vector<1x512xf32>
    %4 = vector.broadcast %3 : vector<1x512xf32> to vector<8x512xf32>
    %5 = arith.addf %2, %4 : vector<8x512xf32>
    %cst_5 = arith.constant 0.000000e+00 : f32
    %6 = vector.broadcast %cst_5 : f32 to vector<8x512xf32>
    %7 = arith.cmpf ogt, %5, %6 : vector<8x512xf32>
    %cst_6 = arith.constant 2.000000e-01 : f32
    %8 = vector.broadcast %cst_6 : f32 to vector<8x512xf32>
    %9 = arith.mulf %8, %5 : vector<8x512xf32>
    %10 = arith.select %7, %5, %9 : vector<8x512xi1>, vector<8x512xf32>
    %c0_7 = arith.constant 0 : index
    %c0_8 = arith.constant 0 : index
    %11 = vector.load %arg4[%c0_7, %c0_8] : memref<512x256xf32, #tpu.memory_space<vmem>>, vector<512x256xf32>
    %cst_9 = arith.constant dense<0.000000e+00> : vector<8x256xf32>
    %12 = tpu.matmul %10, %11, %cst_9 {dimension_numbers = #tpu.dot_dimension_numbers<[1], [0], [0], [1], [0, 0, 1, 1], [], []>} : vector<8x512xf32>, vector<512x256xf32>, vector<8x256xf32> -> vector<8x256xf32>
    %c0_10 = arith.constant 0 : index
    %c0_11 = arith.constant 0 : index
    %13 = vector.load %arg5[%c0_10, %c0_11] : memref<1x256xf32, #tpu.memory_space<vmem>>, vector<1x256xf32>
    %14 = vector.broadcast %13 : vector<1x256xf32> to vector<8x256xf32>
    %15 = arith.addf %12, %14 : vector<8x256xf32>
    %cst_12 = arith.constant 0.000000e+00 : f32
    %16 = vector.broadcast %cst_12 : f32 to vector<8x256xf32>
    %17 = arith.cmpf ogt, %15, %16 : vector<8x256xf32>
    %cst_13 = arith.constant 2.000000e-01 : f32
    %18 = vector.broadcast %cst_13 : f32 to vector<8x256xf32>
    %19 = arith.mulf %18, %15 : vector<8x256xf32>
    %20 = arith.select %17, %15, %19 : vector<8x256xi1>, vector<8x256xf32>
    %c0_14 = arith.constant 0 : index
    %c0_15 = arith.constant 0 : index
    %21 = vector.load %arg6[%c0_14, %c0_15] : memref<256x128xf32, #tpu.memory_space<vmem>>, vector<256x128xf32>
    %cst_16 = arith.constant dense<0.000000e+00> : vector<8x128xf32>
    %22 = tpu.matmul %20, %21, %cst_16 {dimension_numbers = #tpu.dot_dimension_numbers<[1], [0], [0], [1], [0, 0, 1, 1], [], []>} : vector<8x256xf32>, vector<256x128xf32>, vector<8x128xf32> -> vector<8x128xf32>
    %c0_17 = arith.constant 0 : index
    %c0_18 = arith.constant 0 : index
    %23 = vector.load %arg7[%c0_17, %c0_18] : memref<1x128xf32, #tpu.memory_space<vmem>>, vector<1x128xf32>
    %24 = vector.broadcast %23 : vector<1x128xf32> to vector<8x128xf32>
    %25 = arith.addf %22, %24 : vector<8x128xf32>
    %c0_19 = arith.constant 0 : index
    %c0_20 = arith.constant 0 : index
    %26 = vector.load %arg8[%c0_19, %c0_20] : memref<8x128xf32, #tpu.memory_space<vmem>>, vector<8x128xf32>
    tpu.vector_store %arg8[%c0_19, %c0_20], %25 {strides = array<i32>} : memref<8x128xf32, #tpu.memory_space<vmem>>, vector<8x128xf32>,
    return
  }
  func.func @transform_0(%arg0: i32) -> (i32, i32) {
    %c0_i32 = arith.constant 0 : i32
    %c0_i32_0 = arith.constant 0 : i32
    return %arg0, %c0_i32 : i32, i32
  }
  func.func @transform_1(%arg0: i32) -> (i32, i32) {
    %c0_i32 = arith.constant 0 : i32
    %c0_i32_0 = arith.constant 0 : i32
    %c0_i32_1 = arith.constant 0 : i32
    return %c0_i32, %c0_i32_0 : i32, i32
  }
  func.func @transform_2(%arg0: i32) -> (i32, i32) {
    %c0_i32 = arith.constant 0 : i32
    %c0_i32_0 = arith.constant 0 : i32
    %c0_i32_1 = arith.constant 0 : i32
    return %c0_i32, %c0_i32_0 : i32, i32
  }
  func.func @transform_3(%arg0: i32) -> (i32, i32) {
    %c0_i32 = arith.constant 0 : i32
    %c0_i32_0 = arith.constant 0 : i32
    %c0_i32_1 = arith.constant 0 : i32
    return %c0_i32, %c0_i32_0 : i32, i32
  }
  func.func @transform_4(%arg0: i32) -> (i32, i32) {
    %c0_i32 = arith.constant 0 : i32
    %c0_i32_0 = arith.constant 0 : i32
    %c0_i32_1 = arith.constant 0 : i32
    return %c0_i32, %c0_i32_0 : i32, i32
  }
  func.func @transform_5(%arg0: i32) -> (i32, i32) {
    %c0_i32 = arith.constant 0 : i32
    %c0_i32_0 = arith.constant 0 : i32
    %c0_i32_1 = arith.constant 0 : i32
    return %c0_i32, %c0_i32_0 : i32, i32
  }
  func.func @transform_6(%arg0: i32) -> (i32, i32) {
    %c0_i32 = arith.constant 0 : i32
    %c0_i32_0 = arith.constant 0 : i32
    %c0_i32_1 = arith.constant 0 : i32
    return %c0_i32, %c0_i32_0 : i32, i32
  }
  func.func @transform_7(%arg0: i32) -> (i32, i32) {
    %c0_i32 = arith.constant 0 : i32
    %c0_i32_0 = arith.constant 0 : i32
    return %arg0, %c0_i32 : i32, i32
  }
}

</mosaic_0001>

<bundles_post_ra>
// kernel: tpu_custom_call.1
= control target key start
LH: loop header
LB: loop body
LE: loop exit
PB: predicated region body
PF: predicated region fallthrough
CT: control target
= control target key end

     0   :  { %12 = vsyncpa [#allocation3], 0  ;;  %s1177_s0 = inlined_call_operand.hbm [shape: f32[8,32], index: 0, kind: input, shape index: {}]   ;;  %s1178_s1 = inlined_call_operand.hbm [shape: f32[32,512], index: 1, kind: input, shape index: {}]   ;;  %s1179_s2 = inlined_call_operand.vmem [shape: f32[1,512], index: 2, kind: input, shape index: {}]   ;;  %s1180_s3 = inlined_call_operand.hbm [shape: f32[512,256], index: 3, kind: input, shape index: {}]   ;;  %s1181_s4 = inlined_call_operand.vmem [shape: f32[1,256], index: 4, kind: input, shape index: {}]   ;;  %s1182_s5 = inlined_call_operand.hbm [shape: f32[256,128], index: 5, kind: input, shape index: {}]   ;;  %s1183_s6 = inlined_call_operand.vmem [shape: f32[1,128], index: 6, kind: input, shape index: {}]   ;;  %s1184_s7 = inlined_call_operand.hbm [shape: f32[8,128], index: 7, kind: output, shape index: {}]  }
   0x1   :  { %13 = vsyncpa [#allocation6], 0 }
   0x2   :  { %14 = vsyncpa [#allocation9], 0 }
   0x3   :  { %15 = vsyncpa [#allocation4], 0  ;;  %s1040_s24 = smov [#allocation5]   ;;  %s922_s28 = scalar_lea.hbm %s1178_s1, 2048 }
   0x4   :  { %s31_s25 = sshll.u32 %s1040_s24, 4  ;;  %p923_p0 = scmp.ne.s32.totalorder %s1178_s1, %s922_s28  ;;  %s32_s25 = int_to_ptr.vmem [resolvable:$true] %s31_s25 }
   0x5   :  { %p926_p1 = scmp.lt.u32.totalorder %s922_s28, %s1178_s1 }
   0x7   :  { %p928_p2 = pnand %p926_p1, %p923_p0 }
   0x9   :  { %931 = shalt.err (!%p928_p2)
}
   0xa   :  { %s932_s10 = scalar_lea.vmem %s32_s25, 2048  ;;  %p937_p4 = scmp.lt.s32.totalorder %s32_s25, %s32_s25 }
   0xb   :  { %p933_p3 = scmp.ne.s32.totalorder %s32_s25, %s932_s10  ;;  %p938_p5 = scmp.lt.s32.totalorder %s932_s10, %s932_s10 }
   0xd   :  { %p939_p6 = por %p938_p5, %p937_p4 }
   0xf   :  { %p940_p7 = pnand %p939_p6, %p933_p3 }
  0x11   :  { %943 = shalt.err (!%p940_p7)
}
  0x12   :  { %s1041_s11 = smov 512   ;;  %s1042_s12 = smov 32  }
  0x13   :  { %37 = dma.hbm_to_vmem [thread:$0]  %s1178_s1, 2048, %s32_s25, [#allocation6], %s1041_s11, %s1041_s11, %s1042_s12  }
  0x14   :  { %s1043_s15 = smov [#allocation2]   ;;  %s1044_s17 = smov [#allocation7]  }
  0x15   :  { %s22_s16 = sshll.u32 %s1043_s15, 4  ;;  %s45_s18 = sshll.u32 %s1044_s17, 4  ;;  %s23_s16 = int_to_ptr.vmem [resolvable:$true] %s22_s16  ;;  %s46_s18 = int_to_ptr.vmem [resolvable:$true] %s45_s18 }
  0x16   :  { %s944_s21 = scalar_lea.hbm %s1177_s0, 128 }
  0x17   :  { %p945_p8 = scmp.ne.s32.totalorder %s1177_s0, %s944_s21  ;;  %p948_p9 = scmp.lt.u32.totalorder %s944_s21, %s1177_s0 }
  0x19   :  { %p950_p10 = pnand %p948_p9, %p945_p8 }
  0x1b   :  { %953 = shalt.err (!%p950_p10)
}
  0x1c   :  { %s954_s1 = scalar_lea.vmem %s23_s16, 128  ;;  %p959_p12 = scmp.lt.s32.totalorder %s23_s16, %s23_s16 }
  0x1d   :  { %p955_p11 = scmp.ne.s32.totalorder %s23_s16, %s954_s1  ;;  %p960_p13 = scmp.lt.s32.totalorder %s954_s1, %s954_s1 }
  0x1f   :  { %p961_p0 = por %p960_p13, %p959_p12 }
  0x21   :  { %p962_p1 = pnand %p961_p0, %p955_p11 }
  0x23   :  { %965 = shalt.err (!%p962_p1)
}
  0x24   :  { %25 = dma.hbm_to_vmem [thread:$0]  %s1177_s0, 128, %s23_s16, [#allocation3]  }
  0x25   :  { %s966_s30 = scalar_lea.hbm %s1180_s3, 16384 }
  0x26   :  { %p967_p2 = scmp.ne.s32.totalorder %s1180_s3, %s966_s30  ;;  %p970_p3 = scmp.lt.u32.totalorder %s966_s30, %s1180_s3 }
  0x28   :  { %p972_p4 = pnand %p970_p3, %p967_p2 }
  0x2a   :  { %975 = shalt.err (!%p972_p4)
}
  0x2b   :  { %s976_s12 = scalar_lea.vmem %s46_s18, 16384  ;;  %p981_p6 = scmp.lt.s32.totalorder %s46_s18, %s46_s18 }
  0x2c   :  { %p977_p5 = scmp.ne.s32.totalorder %s46_s18, %s976_s12  ;;  %p982_p7 = scmp.lt.s32.totalorder %s976_s12, %s976_s12 }
  0x2e   :  { %p983_p8 = por %p982_p7, %p981_p6 }
  0x30   :  { %p984_p9 = pnand %p983_p8, %p977_p5 }
  0x32   :  { %987 = shalt.err (!%p984_p9)
}
  0x33   :  { %s1045_s0 = smov 256   ;;  %s1046_s13 = smov 16  }
  0x34   :  { %51 = dma.hbm_to_vmem [thread:$0]  %s1180_s3, 16384, %s46_s18, [#allocation6], %s1045_s0, %s1045_s0, %s1046_s13  }
  0x35   :  { %s1047_s16 = smov [#allocation8]   ;;  %s988_s21 = scalar_lea.hbm %s1182_s5, 4096 }
  0x36   :  { %s59_s17 = sshll.u32 %s1047_s16, 4  ;;  %p989_p10 = scmp.ne.s32.totalorder %s1182_s5, %s988_s21  ;;  %s60_s17 = int_to_ptr.vmem [resolvable:$true] %s59_s17 }
  0x37   :  { %p992_p11 = scmp.lt.u32.totalorder %s988_s21, %s1182_s5 }
  0x39   :  { %p994_p12 = pnand %p992_p11, %p989_p10 }
  0x3b   :  { %997 = shalt.err (!%p994_p12)
}
  0x3c   :  { %s998_s1 = scalar_lea.vmem %s60_s17, 4096  ;;  %p1003_p0 = scmp.lt.s32.totalorder %s60_s17, %s60_s17 }
  0x3d   :  { %p999_p13 = scmp.ne.s32.totalorder %s60_s17, %s998_s1  ;;  %p1004_p1 = scmp.lt.s32.totalorder %s998_s1, %s998_s1 }
  0x3f   :  { %p1005_p2 = por %p1004_p1, %p1003_p0 }
  0x41   :  { %p1006_p3 = pnand %p1005_p2, %p999_p13 }
  0x43   :  { %1009 = shalt.err (!%p1006_p3)
}
  0x44   :  { %s1048_s3 = smov 128   ;;  %s1049_s18 = smov 8  }
  0x45   :  { %65 = dma.hbm_to_vmem [thread:$0]  %s1182_s5, 4096, %s60_s17, [#allocation9], %s1048_s3, %s1048_s3, %s1049_s18  }
  0x46   :  { %1032 = dma.done.wait [#allocation3], 128  }
  0x47   :  { %1033 = vsyncadd [#allocation3], 4294967168 }
  0x48   :  { %1034 = dma.done.wait [#allocation6], 18432  }
  0x49   :  { %1035 = vsyncadd [#allocation6], 4294948864 }
  0x4a   :  { %1036 = dma.done.wait [#allocation9], 4096  }
  0x4b   :  { %1037 = vsyncadd [#allocation9], 4294963200  ;;  %v1050_v0 = vmov 0.0   ;;  %v82_v1 = vld [vmem:[#allocation5 + $0x8] sm:$0xff]  ;;  %v81_v3 = vld [vmem:[#allocation5] sm:$0xff]  ;;  %vm119_vm0 = vcmask 261120  }
  0x4c   :  { %187 = vmatprep.mubr.f32.mxu0 %v1050_v0  ;;  %v86_v2 = vld [vmem:[#allocation5 + $0x28] sm:$0xff]  ;;  %v85_v5 = vld [vmem:[#allocation5 + $0x20] sm:$0xff]  ;;  %v84_v12 = vld [vmem:[#allocation5 + $0x18] sm:$0xff]  ;;  %s1051_s8 = smov [#allocation10]  }
  0x4d   :  { %v730_v4 = vpack.c.bf16 %v86_v2, %v82_v1  ;;  %v90_v6 = vld [vmem:[#allocation5 + $0x48] sm:$0xff]  ;;  %v732_v8 = vpack.c.bf16 %v85_v5, %v81_v3  ;;  %v89_v10 = vld [vmem:[#allocation5 + $0x40] sm:$0xff]  ;;  %v88_v13 = vld [vmem:[#allocation5 + $0x38] sm:$0xff]  ;;  %s681_s9 = sshll.u32 %s1051_s8, 4  ;;  %s682_s9 = int_to_ptr.vmem [resolvable:$true] %s681_s9 }
  0x4e   :  { %v94_v7 = vld [vmem:[#allocation5 + $0x68] sm:$0xff]  ;;  %v93_v11 = vld [vmem:[#allocation5 + $0x60] sm:$0xff]  ;;  %v83_v15 = vld [vmem:[#allocation5 + $0x10] sm:$0xff]  ;;  %v738_v17 = vpack.c.bf16 %v88_v13, %v84_v12  ;;  %s1010_s10 = scalar_lea.vmem %s682_s9, 128  ;;  %p1015_p5 = scmp.lt.s32.totalorder %s682_s9, %s682_s9 }
  0x4f   :  { %v734_v9 = vpack.c.bf16 %v94_v7, %v90_v6  ;;  %731 = vmatprep.subr.bf16.mxu0 %v730_v4  ;;  %v736_v14 = vpack.c.bf16 %v93_v11, %v89_v10  ;;  %v87_v16 = vld [vmem:[#allocation5 + $0x30] sm:$0xff]  ;;  %v92_v18 = vld [vmem:[#allocation5 + $0x58] sm:$0xff]  ;;  %v278_v20 = vld [vmem:[#allocation7 + $0x8] sm:$0xff]  ;;  %p1011_p4 = scmp.ne.s32.totalorder %s682_s9, %s1010_s10  ;;  %p1016_p6 = scmp.lt.s32.totalorder %s1010_s10, %s1010_s10 }
  0x50   :  { %733 = vmatpush1.bf16.msra.mxu0 %v732_v8  ;;  %v96_v19 = vld [vmem:[#allocation5 + $0x78] sm:$0xff]  ;;  %v277_v23 = vld [vmem:[#allocation7] sm:$0xff]  ;;  %v279_v24 = vld [vmem:[#allocation7 + $0x10] sm:$0xff]  ;;  %v740_v30 = vpack.c.bf16 %v87_v16, %v83_v15 }
  0x51   :  { %735 = vmatprep.subr.bf16.mxu0 %v734_v9  ;;  %v80_v21 = vld [vmem:[#allocation2] sm:$0xff]  ;;  %v748_v26 = vpack.c.bf16 %v279_v24, %v277_v23  ;;  %v282_v27 = vld [vmem:[#allocation7 + $0x28] sm:$0xff]  ;;  %v281_v29 = vld [vmem:[#allocation7 + $0x20] sm:$0xff]  ;;  %v742_v35 = vpack.c.bf16 %v96_v19, %v92_v18  ;;  %p1017_p7 = por %p1016_p6, %p1015_p5 }
  0x52   :  { %v280_v22 = vld [vmem:[#allocation7 + $0x18] sm:$0xff]  ;;  %v283_v32 = vld [vmem:[#allocation7 + $0x30] sm:$0xff]  ;;  %v286_v33 = vld [vmem:[#allocation7 + $0x48] sm:$0xff] }
  0x53   :  { %v746_v25 = vpack.c.bf16 %v280_v22, %v278_v20  ;;  %v284_v28 = vld [vmem:[#allocation7 + $0x38] sm:$0xff]  ;;  %v91_v36 = vld [vmem:[#allocation5 + $0x50] sm:$0xff]  ;;  %v752_v38 = vpack.c.bf16 %v283_v32, %v281_v29  ;;  %v342_v39 = vld [vmem:[#allocation7 + $0x208] sm:$0xff]  ;;  %p1018_p8 = pnand %p1017_p7, %p1011_p4 }
  0x54   :  { %737 = vmatpush1.bf16.msra.mxu0 %v736_v14  ;;  %v750_v31 = vpack.c.bf16 %v284_v28, %v282_v27  ;;  %v288_v34 = vld [vmem:[#allocation7 + $0x58] sm:$0xff]  ;;  %v95_v37 = vld [vmem:[#allocation5 + $0x70] sm:$0xff]  ;;  %v285_v42 = vld [vmem:[#allocation7 + $0x40] sm:$0xff] }
  0x55   :  { %739 = vmatprep.subr.bf16.mxu0 %v738_v17  ;;  %747 = vmatprep.subr.bf16.mxu1 %v746_v25  ;;  %v344_v40 = vld [vmem:[#allocation7 + $0x218] sm:$0xff]  ;;  %v754_v41 = vpack.c.bf16 %v288_v34, %v286_v33  ;;  %v287_v43 = vld [vmem:[#allocation7 + $0x50] sm:$0xff]  ;;  %v744_v44 = vpack.c.bf16 %v95_v37, %v91_v36  ;;  %v290_v45 = vld [vmem:[#allocation7 + $0x68] sm:$0xff] }
  0x56   :  { %749 = vmatpush1.bf16.msra.mxu1 %v748_v26  ;;  %v292_v46 = vld [vmem:[#allocation7 + $0x78] sm:$0xff]  ;;  %v810_v47 = vpack.c.bf16 %v344_v40, %v342_v39  ;;  %v341_v48 = vld [vmem:[#allocation7 + $0x200] sm:$0xff]  ;;  %v343_v49 = vld [vmem:[#allocation7 + $0x210] sm:$0xff]  ;;  %v756_v50 = vpack.c.bf16 %v287_v43, %v285_v42 }
  0x57   :  { %692 = vmatmul.mubr.msk.f32.vlgmr.msra.gmra.mrb[0].mxu0 %vm119_vm0, %v80_v21  ;;  %751 = vmatprep.subr.bf16.mxu1 %v750_v31  ;;  %v346_v51 = vld [vmem:[#allocation7 + $0x228] sm:$0xff]  ;;  %v348_v52 = vld [vmem:[#allocation7 + $0x238] sm:$0xff]  ;;  %v758_v53 = vpack.c.bf16 %v292_v46, %v290_v45  ;;  %v289_v54 = vld [vmem:[#allocation7 + $0x60] sm:$0xff]  ;;  %v812_v56 = vpack.c.bf16 %v343_v49, %v341_v48 }
  0x58   :  { %741 = vmatpush1.bf16.msra.mxu0 %v740_v30  ;;  %258 = vmatprep.mubr.f32.mxu0 %v1050_v0  ;;  %v291_v55 = vld [vmem:[#allocation7 + $0x70] sm:$0xff]  ;;  %v294_v57 = vld [vmem:[#allocation7 + $0x88] sm:$0xff]  ;;  %v296_v58 = vld [vmem:[#allocation7 + $0x98] sm:$0xff]  ;;  %v814_v59 = vpack.c.bf16 %v348_v52, %v346_v51 }
  0x59   :  { %743 = vmatprep.subr.bf16.mxu0 %v742_v35  ;;  %v345_v60 = vld [vmem:[#allocation7 + $0x220] sm:$0xff]  ;;  %v347_v61 = vld [vmem:[#allocation7 + $0x230] sm:$0xff]  ;;  %v760_v62 = vpack.c.bf16 %v291_v55, %v289_v54  ;;  %v350_v63 = vld [vmem:[#allocation7 + $0x248] sm:$0xff]  ;;  %v762_v1 = vpack.c.bf16 %v296_v58, %v294_v57 }
  0x5a   :  { %753 = vmatpush1.bf16.msra.mxu1 %v752_v38  ;;  %v352_v0 = vld [vmem:[#allocation7 + $0x258] sm:$0xff]  ;;  %v293_v2 = vld [vmem:[#allocation7 + $0x80] sm:$0xff]  ;;  %v295_v3 = vld [vmem:[#allocation7 + $0x90] sm:$0xff]  ;;  %v816_v4 = vpack.c.bf16 %v347_v61, %v345_v60 }
  0x5b   :  { %755 = vmatprep.subr.bf16.mxu1 %v754_v41  ;;  %v298_v5 = vld [vmem:[#allocation7 + $0xa8] sm:$0xff]  ;;  %v300_v6 = vld [vmem:[#allocation7 + $0xb8] sm:$0xff]  ;;  %v818_v7 = vpack.c.bf16 %v352_v0, %v350_v63  ;;  %v349_v8 = vld [vmem:[#allocation7 + $0x240] sm:$0xff]  ;;  %v764_v10 = vpack.c.bf16 %v295_v3, %v293_v2 }
  0x5c   :  { %745 = vmatpush1.bf16.msra.mxu0 %v744_v44  ;;  %v351_v9 = vld [vmem:[#allocation7 + $0x250] sm:$0xff]  ;;  %v354_v11 = vld [vmem:[#allocation7 + $0x268] sm:$0xff]  ;;  %v356_v12 = vld [vmem:[#allocation7 + $0x278] sm:$0xff]  ;;  %v766_v13 = vpack.c.bf16 %v300_v6, %v298_v5 }
  0x5d   :  { %811 = vmatprep.subr.bf16.mxu0 %v810_v47  ;;  %v297_v14 = vld [vmem:[#allocation7 + $0xa0] sm:$0xff]  ;;  %v299_v15 = vld [vmem:[#allocation7 + $0xb0] sm:$0xff]  ;;  %v820_v16 = vpack.c.bf16 %v351_v9, %v349_v8  ;;  %v302_v17 = vld [vmem:[#allocation7 + $0xc8] sm:$0xff]  ;;  %v822_v19 = vpack.c.bf16 %v356_v12, %v354_v11 }
  0x5e   :  { %757 = vmatpush1.bf16.msra.mxu1 %v756_v50  ;;  %v304_v18 = vld [vmem:[#allocation7 + $0xd8] sm:$0xff]  ;;  %v353_v20 = vld [vmem:[#allocation7 + $0x260] sm:$0xff]  ;;  %v768_v22 = vpack.c.bf16 %v299_v15, %v297_v14  ;;  %v358_v23 = vld [vmem:[#allocation7 + $0x288] sm:$0xff] }
  0x5f   :  { %693 = vmatmul.mubr.msk.f32.vlgmr.msra.gmra.mrb[2].mxu0 %vm119_vm0, %v80_v21  ;;  %759 = vmatprep.subr.bf16.mxu1 %v758_v53  ;;  %v355_v21 = vld [vmem:[#allocation7 + $0x270] sm:$0xff]  ;;  %v360_v24 = vld [vmem:[#allocation7 + $0x298] sm:$0xff]  ;;  %v770_v25 = vpack.c.bf16 %v304_v18, %v302_v17  ;;  %v301_v26 = vld [vmem:[#allocation7 + $0xc0] sm:$0xff] }
  0x60   :  { %813 = vmatpush1.bf16.msra.mxu0 %v812_v56  ;;  %v303_v27 = vld [vmem:[#allocation7 + $0xd0] sm:$0xff]  ;;  %v824_v28 = vpack.c.bf16 %v355_v21, %v353_v20  ;;  %v306_v29 = vld [vmem:[#allocation7 + $0xe8] sm:$0xff]  ;;  %v308_v30 = vld [vmem:[#allocation7 + $0xf8] sm:$0xff]  ;;  %v826_v31 = vpack.c.bf16 %v360_v24, %v358_v23 }
  0x61   :  { %815 = vmatprep.subr.bf16.mxu0 %v814_v59  ;;  %v357_v32 = vld [vmem:[#allocation7 + $0x280] sm:$0xff]  ;;  %v359_v33 = vld [vmem:[#allocation7 + $0x290] sm:$0xff]  ;;  %v772_v34 = vpack.c.bf16 %v303_v27, %v301_v26  ;;  %v362_v35 = vld [vmem:[#allocation7 + $0x2a8] sm:$0xff]  ;;  %v774_v37 = vpack.c.bf16 %v308_v30, %v306_v29 }
  0x62   :  { %761 = vmatpush1.bf16.msra.mxu1 %v760_v62  ;;  %v364_v36 = vld [vmem:[#allocation7 + $0x2b8] sm:$0xff]  ;;  %v305_v38 = vld [vmem:[#allocation7 + $0xe0] sm:$0xff]  ;;  %v307_v39 = vld [vmem:[#allocation7 + $0xf0] sm:$0xff]  ;;  %v828_v40 = vpack.c.bf16 %v359_v33, %v357_v32 }
  0x63   :  { %763 = vmatprep.subr.bf16.mxu1 %v762_v1  ;;  %v310_v41 = vld [vmem:[#allocation7 + $0x108] sm:$0xff]  ;;  %v312_v42 = vld [vmem:[#allocation7 + $0x118] sm:$0xff]  ;;  %v830_v43 = vpack.c.bf16 %v364_v36, %v362_v35  ;;  %v361_v44 = vld [vmem:[#allocation7 + $0x2a0] sm:$0xff]  ;;  %v776_v46 = vpack.c.bf16 %v307_v39, %v305_v38 }
  0x64   :  { %817 = vmatpush1.bf16.msra.mxu0 %v816_v4  ;;  %v363_v45 = vld [vmem:[#allocation7 + $0x2b0] sm:$0xff]  ;;  %v366_v47 = vld [vmem:[#allocation7 + $0x2c8] sm:$0xff]  ;;  %v368_v48 = vld [vmem:[#allocation7 + $0x2d8] sm:$0xff]  ;;  %v778_v49 = vpack.c.bf16 %v312_v42, %v310_v41 }
  0x65   :  { %819 = vmatprep.subr.bf16.mxu0 %v818_v7  ;;  %v309_v50 = vld [vmem:[#allocation7 + $0x100] sm:$0xff]  ;;  %v311_v51 = vld [vmem:[#allocation7 + $0x110] sm:$0xff]  ;;  %v832_v52 = vpack.c.bf16 %v363_v45, %v361_v44  ;;  %v314_v53 = vld [vmem:[#allocation7 + $0x128] sm:$0xff]  ;;  %v834_v55 = vpack.c.bf16 %v368_v48, %v366_v47 }
  0x66   :  { %765 = vmatpush1.bf16.msra.mxu1 %v764_v10  ;;  %v316_v54 = vld [vmem:[#allocation7 + $0x138] sm:$0xff]  ;;  %v365_v56 = vld [vmem:[#allocation7 + $0x2c0] sm:$0xff]  ;;  %v367_v57 = vld [vmem:[#allocation7 + $0x2d0] sm:$0xff]  ;;  %v780_v58 = vpack.c.bf16 %v311_v51, %v309_v50 }
  0x67   :  { %767 = vmatprep.subr.bf16.mxu1 %v766_v13  ;;  %v370_v59 = vld [vmem:[#allocation7 + $0x2e8] sm:$0xff]  ;;  %v372_v60 = vld [vmem:[#allocation7 + $0x2f8] sm:$0xff]  ;;  %v782_v61 = vpack.c.bf16 %v316_v54, %v314_v53  ;;  %v313_v62 = vld [vmem:[#allocation7 + $0x120] sm:$0xff]  ;;  %v836_v0 = vpack.c.bf16 %v367_v57, %v365_v56 }
  0x68   :  { %821 = vmatpush1.bf16.msra.mxu0 %v820_v16  ;;  %v315_v63 = vld [vmem:[#allocation7 + $0x130] sm:$0xff]  ;;  %v318_v1 = vld [vmem:[#allocation7 + $0x148] sm:$0xff]  ;;  %v320_v2 = vld [vmem:[#allocation7 + $0x158] sm:$0xff]  ;;  %v838_v3 = vpack.c.bf16 %v372_v60, %v370_v59 }
  0x69   :  { %823 = vmatprep.subr.bf16.mxu0 %v822_v19  ;;  %v369_v4 = vld [vmem:[#allocation7 + $0x2e0] sm:$0xff]  ;;  %v371_v5 = vld [vmem:[#allocation7 + $0x2f0] sm:$0xff]  ;;  %v784_v6 = vpack.c.bf16 %v315_v63, %v313_v62  ;;  %v374_v7 = vld [vmem:[#allocation7 + $0x308] sm:$0xff]  ;;  %v786_v9 = vpack.c.bf16 %v320_v2, %v318_v1 }
  0x6a   :  { %769 = vmatpush1.bf16.msra.mxu1 %v768_v22  ;;  %v376_v8 = vld [vmem:[#allocation7 + $0x318] sm:$0xff]  ;;  %v317_v10 = vld [vmem:[#allocation7 + $0x140] sm:$0xff]  ;;  %v319_v11 = vld [vmem:[#allocation7 + $0x150] sm:$0xff]  ;;  %v840_v12 = vpack.c.bf16 %v371_v5, %v369_v4 }
  0x6b   :  { %771 = vmatprep.subr.bf16.mxu1 %v770_v25  ;;  %v322_v13 = vld [vmem:[#allocation7 + $0x168] sm:$0xff]  ;;  %v324_v14 = vld [vmem:[#allocation7 + $0x178] sm:$0xff]  ;;  %v842_v15 = vpack.c.bf16 %v376_v8, %v374_v7  ;;  %v373_v16 = vld [vmem:[#allocation7 + $0x300] sm:$0xff]  ;;  %v788_v18 = vpack.c.bf16 %v319_v11, %v317_v10 }
  0x6c   :  { %825 = vmatpush1.bf16.msra.mxu0 %v824_v28  ;;  %v375_v17 = vld [vmem:[#allocation7 + $0x310] sm:$0xff]  ;;  %v378_v19 = vld [vmem:[#allocation7 + $0x328] sm:$0xff]  ;;  %v380_v20 = vld [vmem:[#allocation7 + $0x338] sm:$0xff]  ;;  %v790_v21 = vpack.c.bf16 %v324_v14, %v322_v13 }
  0x6d   :  { %827 = vmatprep.subr.bf16.mxu0 %v826_v31  ;;  %v321_v22 = vld [vmem:[#allocation7 + $0x160] sm:$0xff]  ;;  %v323_v23 = vld [vmem:[#allocation7 + $0x170] sm:$0xff]  ;;  %v844_v24 = vpack.c.bf16 %v375_v17, %v373_v16  ;;  %v326_v25 = vld [vmem:[#allocation7 + $0x188] sm:$0xff]  ;;  %v846_v27 = vpack.c.bf16 %v380_v20, %v378_v19 }
  0x6e   :  { %773 = vmatpush1.bf16.msra.mxu1 %v772_v34  ;;  %v328_v26 = vld [vmem:[#allocation7 + $0x198] sm:$0xff]  ;;  %v377_v28 = vld [vmem:[#allocation7 + $0x320] sm:$0xff]  ;;  %v379_v29 = vld [vmem:[#allocation7 + $0x330] sm:$0xff]  ;;  %v792_v30 = vpack.c.bf16 %v323_v23, %v321_v22 }
  0x6f   :  { %775 = vmatprep.subr.bf16.mxu1 %v774_v37  ;;  %v382_v31 = vld [vmem:[#allocation7 + $0x348] sm:$0xff]  ;;  %v384_v32 = vld [vmem:[#allocation7 + $0x358] sm:$0xff]  ;;  %v794_v33 = vpack.c.bf16 %v328_v26, %v326_v25  ;;  %v325_v34 = vld [vmem:[#allocation7 + $0x180] sm:$0xff]  ;;  %v848_v36 = vpack.c.bf16 %v379_v29, %v377_v28  ;;  %v99_v29 = vlaneseq }
  0x70   :  { %829 = vmatpush1.bf16.msra.mxu0 %v828_v40  ;;  %v327_v35 = vld [vmem:[#allocation7 + $0x190] sm:$0xff]  ;;  %v330_v37 = vld [vmem:[#allocation7 + $0x1a8] sm:$0xff]  ;;  %v332_v38 = vld [vmem:[#allocation7 + $0x1b8] sm:$0xff]  ;;  %v850_v39 = vpack.c.bf16 %v384_v32, %v382_v31 }
  0x71   :  { %831 = vmatprep.subr.bf16.mxu0 %v830_v43  ;;  %v381_v40 = vld [vmem:[#allocation7 + $0x340] sm:$0xff]  ;;  %v383_v41 = vld [vmem:[#allocation7 + $0x350] sm:$0xff]  ;;  %v796_v42 = vpack.c.bf16 %v327_v35, %v325_v34  ;;  %v386_v43 = vld [vmem:[#allocation7 + $0x368] sm:$0xff]  ;;  %v798_v45 = vpack.c.bf16 %v332_v38, %v330_v37 }
  0x72   :  { %777 = vmatpush1.bf16.msra.mxu1 %v776_v46  ;;  %v388_v44 = vld [vmem:[#allocation7 + $0x378] sm:$0xff]  ;;  %v329_v46 = vld [vmem:[#allocation7 + $0x1a0] sm:$0xff]  ;;  %v331_v47 = vld [vmem:[#allocation7 + $0x1b0] sm:$0xff]  ;;  %v852_v48 = vpack.c.bf16 %v383_v41, %v381_v40 }
  0x73   :  { %779 = vmatprep.subr.bf16.mxu1 %v778_v49  ;;  %v854_v49 = vpack.c.bf16 %v388_v44, %v386_v43  ;;  %v385_v50 = vld [vmem:[#allocation7 + $0x360] sm:$0xff]  ;;  %v387_v51 = vld [vmem:[#allocation7 + $0x370] sm:$0xff]  ;;  %v334_v54 = vld [vmem:[#allocation7 + $0x1c8] sm:$0xff] }
  0x74   :  { %833 = vmatpush1.bf16.msra.mxu0 %v832_v52  ;;  %v800_v52 = vpack.c.bf16 %v331_v47, %v329_v46  ;;  %v856_v53 = vpack.c.bf16 %v387_v51, %v385_v50  ;;  %v390_v56 = vld [vmem:[#allocation7 + $0x388] sm:$0xff]  ;;  %v333_v59 = vld [vmem:[#allocation7 + $0x1c0] sm:$0xff]  ;;  %v335_v60 = vld [vmem:[#allocation7 + $0x1d0] sm:$0xff] }
  0x75   :  { %835 = vmatprep.subr.bf16.mxu0 %v834_v55  ;;  %v336_v55 = vld [vmem:[#allocation7 + $0x1d8] sm:$0xff]  ;;  %v804_v62 = vpack.c.bf16 %v335_v60, %v333_v59  ;;  %v389_v63 = vld [vmem:[#allocation7 + $0x380] sm:$0xff]  ;;  %v338_v2 = vld [vmem:[#allocation7 + $0x1e8] sm:$0xff] }
  0x76   :  { %781 = vmatpush1.bf16.msra.mxu1 %v780_v58  ;;  %v802_v57 = vpack.c.bf16 %v336_v55, %v334_v54  ;;  %v392_v58 = vld [vmem:[#allocation7 + $0x398] sm:$0xff]  ;;  %v394_v4 = vld [vmem:[#allocation7 + $0x3a8] sm:$0xff]  ;;  %v337_v7 = vld [vmem:[#allocation7 + $0x1e0] sm:$0xff] }
  0x77   :  { %783 = vmatprep.subr.bf16.mxu1 %v782_v61  ;;  %v858_v61 = vpack.c.bf16 %v392_v58, %v390_v56  ;;  %v339_v8 = vld [vmem:[#allocation7 + $0x1f0] sm:$0xff]  ;;  %v393_v11 = vld [vmem:[#allocation7 + $0x3a0] sm:$0xff]  ;;  %v398_v14 = vld [vmem:[#allocation7 + $0x3c8] sm:$0xff] }
  0x78   :  { %837 = vmatpush1.bf16.msra.mxu0 %v836_v0  ;;  %v391_v0 = vld [vmem:[#allocation7 + $0x390] sm:$0xff]  ;;  %v808_v10 = vpack.c.bf16 %v339_v8, %v337_v7  ;;  %v397_v17 = vld [vmem:[#allocation7 + $0x3c0] sm:$0xff]  ;;  %v402_v20 = vld [vmem:[#allocation7 + $0x3e8] sm:$0xff] }
  0x79   :  { %839 = vmatprep.subr.bf16.mxu0 %v838_v3  ;;  %v860_v1 = vpack.c.bf16 %v391_v0, %v389_v63  ;;  %v340_v3 = vld [vmem:[#allocation7 + $0x1f8] sm:$0xff]  ;;  %v401_v23 = vld [vmem:[#allocation7 + $0x3e0] sm:$0xff]  ;;  %v566_v43 = vld [vmem:[#allocation8 + $0x8] sm:$0xff] }
  0x7a   :  { %785 = vmatpush1.bf16.msra.mxu1 %v784_v6  ;;  %v806_v5 = vpack.c.bf16 %v340_v3, %v338_v2  ;;  %v396_v6 = vld [vmem:[#allocation7 + $0x3b8] sm:$0xff]  ;;  %v581_v26 = vld [vmem:[#allocation8 + $0x80] sm:$0xff]  ;;  %v587_v3 = vld [vmem:[#allocation8 + $0xb0] sm:$0xff] }
  0x7b   :  { %787 = vmatprep.subr.bf16.mxu1 %v786_v9  ;;  %v862_v9 = vpack.c.bf16 %v396_v6, %v394_v4  ;;  %v97_v32 = vld [vmem:[%s1179_s2] sm:$0xf]  ;;  %v585_v56 = vld [vmem:[#allocation8 + $0xa0] sm:$0xff] }
  0x7c   :  { %841 = vmatpush1.bf16.msra.mxu0 %v840_v12  ;;  %v395_v12 = vld [vmem:[#allocation7 + $0x3b0] sm:$0xff]  ;;  %v584_v46 = vld [vmem:[#allocation8 + $0x98] sm:$0xff]  ;;  %v569_v0 = vld [vmem:[#allocation8 + $0x20] sm:$0xff] }
  0x7d   :  { %843 = vmatprep.subr.bf16.mxu0 %v842_v15  ;;  %v864_v13 = vpack.c.bf16 %v395_v12, %v393_v11  ;;  %v400_v15 = vld [vmem:[#allocation7 + $0x3d8] sm:$0xff] }
  0x7e   :  { %789 = vmatpush1.bf16.msra.mxu1 %v788_v18  ;;  %v866_v16 = vpack.c.bf16 %v400_v15, %v398_v14  ;;  %v399_v18 = vld [vmem:[#allocation7 + $0x3d0] sm:$0xff]  ;;  %v568_v54 = vld [vmem:[#allocation8 + $0x18] sm:$0xff]  ;;  %v590_v14 = vld [vmem:[#allocation8 + $0xc8] sm:$0xff] }
  0x7f   :  { %791 = vmatprep.subr.bf16.mxu1 %v790_v21  ;;  %v868_v19 = vpack.c.bf16 %v399_v18, %v397_v17  ;;  %v404_v21 = vld [vmem:[#allocation7 + $0x3f8] sm:$0xff]  ;;  %v574_v17 = vld [vmem:[#allocation8 + $0x48] sm:$0xff] }
  0x80   :  { %845 = vmatpush1.bf16.msra.mxu0 %v844_v24  ;;  %v870_v22 = vpack.c.bf16 %v404_v21, %v402_v20  ;;  %v403_v24 = vld [vmem:[#allocation7 + $0x3f0] sm:$0xff]  ;;  %v588_v4 = vld [vmem:[#allocation8 + $0xb8] sm:$0xff] }
  0x81   :  { %847 = vmatprep.subr.bf16.mxu0 %v846_v27  ;;  %v872_v25 = vpack.c.bf16 %v403_v24, %v401_v23  ;;  %v582_v27 = vld [vmem:[#allocation8 + $0x88] sm:$0xff]  ;;  %v886_v8 = vpack.c.bf16 %v588_v4, %v587_v3  ;;  %v592_v20 = vld [vmem:[#allocation8 + $0xd8] sm:$0xff] }
  0x82   :  { %793 = vmatpush1.bf16.msra.mxu1 %v792_v30  ;;  %v874_v28 = vpack.c.bf16 %v582_v27, %v581_v26  ;;  %v1142_v30 = vshrl.u32 %v99_v29, 7  ;;  %v576_v23 = vld [vmem:[#allocation8 + $0x58] sm:$0xff]  ;;  %v594_v26 = vld [vmem:[#allocation8 + $0xe8] sm:$0xff] }
  0x83   :  { %795 = vmatprep.subr.bf16.mxu1 %v794_v33  ;;  %v578_v29 = vld [vmem:[#allocation8 + $0x68] sm:$0xff] }
  0x84   :  { %849 = vmatpush1.bf16.msra.mxu0 %v848_v36  ;;  %v101_v31 = vsub.s32 0, %v1142_v30  ;;  %v105_v33 = vsub.s32 1, %v1142_v30  ;;  %v113_v41 = vsub.s32 3, %v1142_v30 }
  0x85   :  { %851 = vmatprep.subr.bf16.mxu0 %v850_v39  ;;  %v109_v39 = vsub.s32 2, %v1142_v30  ;;  %v694_v30 = vld [vmem:[%s1183_s6] ss:$0 sm:$0xff] }
  0x86   :  { %797 = vmatpush1.bf16.msra.mxu1 %v796_v42  ;;  %v102_v34 = vrot.slane %v97_v32, %v101_v31  ;;  %v106_v35 = vrot.slane %v97_v32, %v105_v33  ;;  %v565_v42 = vld [vmem:[#allocation8] sm:$0xff]  ;;  %v114_v51 = vrot.slane %v97_v32, %v113_v41 }
  0x87   :  { %799 = vmatprep.subr.bf16.mxu1 %v798_v45  ;;  %v583_v45 = vld [vmem:[#allocation8 + $0x90] sm:$0xff] }
  0x88   :  { %853 = vmatpush1.bf16.msra.mxu0 %v852_v48  ;;  %v110_v48 = vrot.slane %v97_v32, %v109_v39 }
  0x89   :  { %855 = vmatprep.subr.bf16.mxu0 %v854_v49  ;;  %v876_v49 = vpack.c.bf16 %v566_v43, %v565_v42 }
  0x8a   :  { %801 = vmatpush1.bf16.msra.mxu1 %v800_v52  ;;  %v878_v52 = vpack.c.bf16 %v584_v46, %v583_v45 }
  0x8b   :  { %803 = vmatprep.subr.bf16.mxu1 %v802_v57  ;;  %v586_v57 = vld [vmem:[#allocation8 + $0xa8] sm:$0xff] }
  0x8c   :  { %857 = vmatpush1.bf16.msra.mxu0 %v856_v53  ;;  %v567_v53 = vld [vmem:[#allocation8 + $0x10] sm:$0xff]  ;;  %v882_v63 = vpack.c.bf16 %v586_v57, %v585_v56 }
  0x8d   :  { %859 = vmatprep.subr.bf16.mxu0 %v858_v61  ;;  %v880_v61 = vpack.c.bf16 %v568_v54, %v567_v53 }
  0x8e   :  { %805 = vmatpush1.bf16.msra.mxu1 %v804_v62 }
  0x8f   :  { %807 = vmatprep.subr.bf16.mxu1 %v806_v5 }
  0x90   :  { %861 = vmatpush1.bf16.msra.mxu0 %v860_v1  ;;  %v570_v1 = vld [vmem:[#allocation8 + $0x28] sm:$0xff] }
  0x91   :  { %863 = vmatprep.subr.bf16.mxu0 %v862_v9  ;;  %v884_v6 = vpack.c.bf16 %v570_v1, %v569_v0  ;;  %v571_v9 = vld [vmem:[#allocation8 + $0x30] sm:$0xff] }
  0x92   :  { %809 = vmatpush1.bf16.msra.mxu1 %v808_v10  ;;  %v572_v10 = vld [vmem:[#allocation8 + $0x38] sm:$0xff] }
  0x93   :  { %875 = vmatprep.subr.bf16.mxu1 %v874_v28  ;;  %v888_v12 = vpack.c.bf16 %v572_v10, %v571_v9  ;;  %v577_v28 = vld [vmem:[#allocation8 + $0x60] sm:$0xff] }
  0x94   :  { %865 = vmatpush1.bf16.msra.mxu0 %v864_v13  ;;  %v589_v13 = vld [vmem:[#allocation8 + $0xc0] sm:$0xff]  ;;  %v900_v32 = vpack.c.bf16 %v578_v29, %v577_v28 }
  0x95   :  { %867 = vmatprep.subr.bf16.mxu0 %v866_v16  ;;  %v890_v15 = vpack.c.bf16 %v590_v14, %v589_v13  ;;  %v573_v16 = vld [vmem:[#allocation8 + $0x40] sm:$0xff] }
  0x96   :  { %v892_v18 = vpack.c.bf16 %v574_v17, %v573_v16 }
  0x98   :  { %869 = vmatpush1.bf16.msra.mxu0 %v868_v19  ;;  %v591_v19 = vld [vmem:[#allocation8 + $0xd0] sm:$0xff] }
  0x99   :  { %871 = vmatprep.subr.bf16.mxu0 %v870_v22  ;;  %v894_v21 = vpack.c.bf16 %v592_v20, %v591_v19  ;;  %v575_v22 = vld [vmem:[#allocation8 + $0x50] sm:$0xff] }
  0x9a   :  { %v896_v24 = vpack.c.bf16 %v576_v23, %v575_v22 }
  0x9c   :  { %873 = vmatpush1.bf16.msra.mxu0 %v872_v25  ;;  %v593_v25 = vld [vmem:[#allocation8 + $0xe0] sm:$0xff] }
  0x9d   :  { %v898_v27 = vpack.c.bf16 %v594_v26, %v593_v25 }
 0x12a   :  { %v189_v36 = vpop.f32.mrb[0].mxu0 }
 0x12b   :  { %v190_v37 = vadd.f32 %v189_v36, %v102_v34  ;;  %v191_v38 = vpop.f32.mrb[1].mxu0  ;;  %v595_v34 = vld [vmem:[#allocation8 + $0xf0] sm:$0xff] }
 0x12c   :  { %v192_v40 = vadd.f32 %v191_v38, %v106_v35  ;;  %v596_v35 = vld [vmem:[#allocation8 + $0xf8] sm:$0xff] }
 0x12d   :  { %v269_v44 = vmul.f32 0.2, %v190_v37  ;;  %vm265_vm2 = vcmp.gt.f32.partialorder %v190_v37, 0.0  ;;  %v902_v36 = vpack.c.bf16 %v596_v35, %v595_v34  ;;  %v580_v38 = vld [vmem:[#allocation8 + $0x78] sm:$0xff] }
 0x12e   :  { %vm266_vm1 = vcmp.gt.f32.partialorder %v192_v40, 0.0  ;;  %v270_v47 = vmul.f32 0.2, %v192_v40 }
 0x12f   :  { %v273_v55 = vsel %vm265_vm2, %v190_v37, %v269_v44  ;;  %v579_v37 = vld [vmem:[#allocation8 + $0x70] sm:$0xff] }
 0x130   :  { %v274_v50 = vsel %vm266_vm1, %v192_v40, %v270_v47  ;;  %v904_v39 = vpack.c.bf16 %v580_v38, %v579_v37  ;;  %v405_v40 = vld [vmem:[%s1181_s4] sm:$0x3] }
 0x131   :  { %481 = vmatprep.mubr.f32.mxu1 %v274_v50  ;;  %v410_v43 = vrot.slane %v405_v40, %v101_v31  ;;  %v414_v44 = vrot.slane %v405_v40, %v105_v33 }
 0x132   :  { %v260_v58 = vpop.f32.mrb[2].mxu0  ;;  %482 = vmatmul.mubr.f32.vlgmr.msra.gmra.mrb[0].mxu1 %v273_v55 }
 0x133   :  { %v261_v59 = vadd.f32 %v260_v58, %v110_v48  ;;  %v262_v60 = vpop.f32.mrb[3].mxu0  ;;  %877 = vmatpush3.bf16.msra.mxu1 %v876_v49 }
 0x134   :  { %v263_v62 = vadd.f32 %v262_v60, %v114_v51  ;;  %879 = vmatprep.subr.bf16.mxu1 %v878_v52 }
 0x135   :  { %v271_v2 = vmul.f32 0.2, %v261_v59  ;;  %vm267_vm3 = vcmp.gt.f32.partialorder %v261_v59, 0.0 }
 0x136   :  { %v272_v5 = vmul.f32 0.2, %v263_v62  ;;  %vm268_vm4 = vcmp.gt.f32.partialorder %v263_v62, 0.0 }
 0x137   :  { %881 = vmatpush3.bf16.msra.mxu1 %v880_v61  ;;  %v275_v11 = vsel %vm267_vm3, %v261_v59, %v271_v2 }
 0x138   :  { %v276_v7 = vsel %vm268_vm4, %v263_v62, %v272_v5  ;;  %883 = vmatprep.subr.bf16.mxu1 %v882_v63 }
 0x139   :  { %552 = vmatprep.mubr.f32.mxu0 %v276_v7 }
 0x13a   :  { %553 = vmatmul.mubr.f32.vlgmr.msra.gmra.mrb[4].mxu0 %v275_v11 }
 0x13b   :  { %885 = vmatpush3.bf16.msra.mxu1 %v884_v6 }
 0x13c   :  { %887 = vmatprep.subr.bf16.mxu1 %v886_v8 }
 0x13f   :  { %889 = vmatpush3.bf16.msra.mxu1 %v888_v12 }
 0x140   :  { %891 = vmatprep.subr.bf16.mxu1 %v890_v15 }
 0x143   :  { %893 = vmatpush3.bf16.msra.mxu1 %v892_v18 }
 0x144   :  { %895 = vmatprep.subr.bf16.mxu1 %v894_v21 }
 0x147   :  { %897 = vmatpush3.bf16.msra.mxu1 %v896_v24 }
 0x148   :  { %899 = vmatprep.subr.bf16.mxu1 %v898_v27 }
 0x14b   :  { %901 = vmatpush3.bf16.msra.mxu1 %v900_v32 }
 0x14c   :  { %903 = vmatprep.subr.bf16.mxu1 %v902_v36 }
 0x14f   :  { %905 = vmatpush3.bf16.msra.mxu1 %v904_v39 }
 0x205   :  { %v483_v41 = vpop.f32.mrb[0].mxu1 }
 0x206   :  { %v485_v42 = vpop.f32.mrb[1].mxu1  ;;  %v484_v45 = vadd.f32 %v483_v41, %v410_v43 }
 0x207   :  { %v486_v46 = vadd.f32 %v485_v42, %v414_v44 }
 0x20d   :  { %v554_v47 = vpop.f32.mrb[4].mxu0 }
 0x20e   :  { %v555_v48 = vadd.f32 %v554_v47, %v484_v45  ;;  %v556_v49 = vpop.f32.mrb[5].mxu0 }
 0x20f   :  { %v557_v50 = vadd.f32 %v556_v49, %v486_v46 }
 0x210   :  { %v561_v51 = vmul.f32 0.2, %v555_v48  ;;  %vm559_vm5 = vcmp.gt.f32.partialorder %v555_v48, 0.0 }
 0x211   :  { %v562_v52 = vmul.f32 0.2, %v557_v50  ;;  %vm560_vm6 = vcmp.gt.f32.partialorder %v557_v50, 0.0 }
 0x212   :  { %v563_v54 = vsel %vm559_vm5, %v555_v48, %v561_v51 }
 0x213   :  { %v564_v53 = vsel %vm560_vm6, %v557_v50, %v562_v52 }
 0x214   :  { %668 = vmatprep.mubr.f32.mxu1 %v564_v53 }
 0x215   :  { %669 = vmatmul.mubr.f32.vlgmr.msra.gmra.mrb[2].mxu1 %v563_v54 }
 0x2e8   :  { %v727_v55 = vpop.f32.mrb[2].mxu1 }
 0x2e9   :  { %v728_v31 = vpop.f32.mrb[3].mxu1 }
 0x2ea   :  { %v729_v33 = vadd.f32 %v728_v31, %v727_v55 }
 0x2ec   :  { %v671_v56 = vadd.f32 %v729_v33, %v694_v30 }
 0x2ee   :  { %674 = vst [vmem:[#allocation10] sm:$0xff] %v671_v56 }
 0x2ef   :  { %1021 = shalt.err (!%p1018_p8)
}
 0x2f0   :  { %s1022_s0 = scalar_lea.hbm %s1184_s7, 128 }
 0x2f1   :  { %p1023_p9 = scmp.ne.s32.totalorder %s1184_s7, %s1022_s0  ;;  %p1026_p10 = scmp.lt.u32.totalorder %s1022_s0, %s1184_s7 }
 0x2f3   :  { %p1028_p11 = pnand %p1026_p10, %p1023_p9 }
 0x2f5   :  { %1031 = shalt.err (!%p1028_p11)
}
 0x2f6   :  { %684 = dma.vmem_to_hbm [thread:$0]  %s682_s9, 128, %s1184_s7, [#allocation4]  }
 0x2f7   :  { %1038 = dma.done.wait [#allocation4], 128  }
 0x2f8   :  { %1039 = vsyncadd [#allocation4], 4294967168 }
 0x2f9   :  { %688 = vsyncpa [#allocation3], 1 }
 0x2fa   :  { %689 = vsyncpa [#allocation6], 1 }
 0x2fb   :  { %690 = vsyncpa [#allocation9], 1 }
 0x2fc   :  { %691 = vsyncpa [#allocation4], 1 }

</bundles_post_ra>
